<compile_context>
chip_gen: v7x
topology: tpu7x:2x2x1
jax: 0.10.0
libtpu: 0.0.40
codegen_flags: <defaults>
</compile_context>

<pallas_src>
import functools

import jax
import jax.numpy as jnp
import numpy as np
from jax.experimental import pallas as pl
from jax.experimental.pallas import tpu as pltpu


_TILE_Q = 512                         # anchor-row tile (multiple of 16)
_TILE_K = 512                         # contrast-col tile (multiple of 128)
_NEG = -1e30                          # "minus inf" that stays exp()-safe in f32
_PAD_LABEL = int(np.iinfo(np.int32).min)   # sentinel label for padded columns
_RESIDENT_BYTES = 8 * 2**20           # contrast features VMEM-resident below this


# ---------------------------------------------------------------------------
# Kernel helpers
# ---------------------------------------------------------------------------
def _init_and_delta(k, m_sc, l_sc, sml_sc, delta_sc):
    @pl.when(k == 0)
    def _():
        tq, tk = delta_sc.shape
        m_sc[...] = jnp.full_like(m_sc, -jnp.inf)
        l_sc[...] = jnp.zeros_like(l_sc)
        sml_sc[...] = jnp.zeros_like(sml_sc)
        # Grid-invariant (col - row) delta matrix, built once per row-block.
        delta_sc[...] = (jax.lax.broadcasted_iota(jnp.int32, (tq, tk), 1)
                         - jax.lax.broadcasted_iota(jnp.int32, (tq, tk), 0))


def _tile_logits(i, k, arow_ref, ccol_ref, bias_ref, delta_sc, inv_temp,
                 col_resident):
    """Per-tile scaled logits, not-diag mask and exp-ready masked logits."""
    tq, tk = delta_sc.shape
    if col_resident:
        # Contrast features are whole-array resident in VMEM: slice out this
        # column tile (aligned dynamic slice, zero extra HBM traffic).
        c = ccol_ref[pl.ds(pl.multiple_of(k * tk, tk), tk), :]
    else:
        c = ccol_ref[...]
    # Contract last dims directly; bf16 operands, f32 accumulation on the MXU.
    logits = jax.lax.dot_general(
        arow_ref[...], c, (((1,), (1,)), ((), ())),
        preferred_element_type=jnp.float32) * inv_temp           # (tq, tk) f32
    # Self-contrast diagonal: one scalar compare against the cached delta.
    not_diag = delta_sc[...] != (i * tq - k * tk)
    # bias_ref is 0 on real columns, -1e30 on padded ones: exp() of the biased
    # value is exactly 0, so padding needs no extra select on e.
    masked = jnp.where(not_diag, logits + bias_ref[...], _NEG)
    return logits, not_diag, masked


def _online_lse(masked, m_sc, l_sc):
    m_prev = m_sc[...]
    m_new = jnp.maximum(m_prev, jnp.max(masked, axis=1, keepdims=True))
    l_sc[...] = (jnp.exp(m_prev - m_new) * l_sc[...]
                 + jnp.sum(jnp.exp(masked - m_new), axis=1, keepdims=True))
    m_sc[...] = m_new


def _finalize(k, out_ref, cnt_ref, m_sc, l_sc, sml_sc, loss_scale):
    @pl.when(k == pl.num_programs(1) - 1)
    def _():
        cnt = cnt_ref[...]                                   # precomputed sum(mask)
        log_denom = m_sc[...] + jnp.log(l_sc[...])
        # sum_j m*log_prob = sum_j m*logits - log_denom * sum_j m
        mean_log_prob_pos = (sml_sc[...] - log_denom * cnt) / (cnt + 1e-9)
        out_ref[...] = (-loss_scale) * mean_log_prob_pos


def _supcon_labels_kernel(lrow_ref, lcol_ref, bias_ref, cnt_ref,
                          arow_ref, ccol_ref, out_ref,
                          m_sc, l_sc, sml_sc, delta_sc,
                          *, inv_temp, loss_scale, col_resident):
    i = pl.program_id(0)
    k = pl.program_id(1)
    _init_and_delta(k, m_sc, l_sc, sml_sc, delta_sc)
    logits, not_diag, masked = _tile_logits(
        i, k, arow_ref, ccol_ref, bias_ref, delta_sc, inv_temp, col_resident)
    _online_lse(masked, m_sc, l_sc)
    # Positive-pair mask rebuilt from labels (padded columns carry a sentinel
    # label so they can never be positive).  where() instead of astype+mul.
    pos = jnp.logical_and(lrow_ref[...] == lcol_ref[...], not_diag)
    sml_sc[...] = sml_sc[...] + jnp.sum(jnp.where(pos, logits, 0.0),
                                        axis=1, keepdims=True)
    _finalize(k, out_ref, cnt_ref, m_sc, l_sc, sml_sc, loss_scale)


def _supcon_mask_kernel(mask_ref, bias_ref, cnt_ref,
                        arow_ref, ccol_ref, out_ref,
                        m_sc, l_sc, sml_sc, delta_sc,
                        *, inv_temp, loss_scale, col_resident):
    i = pl.program_id(0)
    k = pl.program_id(1)
    _init_and_delta(k, m_sc, l_sc, sml_sc, delta_sc)
    logits, not_diag, masked = _tile_logits(
        i, k, arow_ref, ccol_ref, bias_ref, delta_sc, inv_temp, col_resident)
    _online_lse(masked, m_sc, l_sc)
    w = jnp.where(not_diag, mask_ref[...].astype(jnp.float32), 0.0)
    sml_sc[...] = sml_sc[...] + jnp.sum(w * logits, axis=1, keepdims=True)
    _finalize(k, out_ref, cnt_ref, m_sc, l_sc, sml_sc, loss_scale)


# ---------------------------------------------------------------------------
# Wrapper
# ---------------------------------------------------------------------------
def _round_up(x, m):
    return ((x + m - 1) // m) * m


def _row_tiling(na):
    """(padded rows, row tile).  Keep >=2 row blocks when feasible so both
    v7x TensorCores get work under dimension_semantics=("parallel", ...)."""
    if na >= 2 * _TILE_Q:
        return _round_up(na, _TILE_Q), _TILE_Q
    if na > 16:
        tq = _round_up(-(-na // 2), 16)      # 16-aligned (bf16-friendly sublanes)
        return 2 * tq, tq
    return 16, 16


def _col_tiling(nc):
    if nc >= _TILE_K:
        return _round_up(nc, _TILE_K), _TILE_K
    ncp = _round_up(nc, 128)
    return ncp, ncp


def _pad_to(x, shape, value=0):
    pads = [(0, t - s) for s, t in zip(x.shape, shape)]
    if all(p == (0, 0) for p in pads):
        return x
    return jnp.pad(x, pads, constant_values=value)


def supcon_loss(features, labels=None, mask=None, *, temperature=0.07,
                contrast_mode='all', base_temperature=0.07,
                compute_dtype=jnp.bfloat16,
                max_resident_bytes=_RESIDENT_BYTES):
    """JAX/Pallas equivalent of SupConLoss.forward.  Returns a scalar f32 loss."""
    features = jnp.asarray(features)
    if features.ndim < 3:
        raise ValueError('`features` needs to be [bsz, n_views, ...], '
                         'at least 3 dimensions are required')
    if features.ndim > 3:
        features = features.reshape(features.shape[0], features.shape[1], -1)
    bsz, n_views, dim = features.shape
    if labels is not None and mask is not None:
        raise ValueError('Cannot define both `labels` and `mask`')

    # torch.cat(torch.unbind(features, dim=1), dim=0): view-major ordering.
    contrast_feature = jnp.concatenate(
        [features[:, v] for v in range(n_views)], axis=0)       # (n_views*bsz, dim)
    if contrast_mode == 'one':
        anchor_feature = features[:, 0]
        anchor_count = 1
    elif contrast_mode == 'all':
        anchor_feature = contrast_feature
        anchor_count = n_views
    else:
        raise ValueError('Unknown mode: {}'.format(contrast_mode))

    na = anchor_count * bsz
    nc = n_views * bsz
    nap, tq = _row_tiling(na)
    ncp, tk = _col_tiling(nc)
    dimp = _round_up(dim, 128)                 # lane-aligned MXU operands

    cf = _pad_to(contrast_feature.astype(compute_dtype), (ncp, dimp))
    if contrast_mode == 'all' and nap == ncp:
        af = cf                                # same HBM buffer for both operands
    else:
        af = _pad_to(anchor_feature.astype(compute_dtype), (nap, dimp))

    # Additive column bias: 0 for real contrast columns, -1e30 for padding.
    col_bias = jnp.where(jnp.arange(ncp) < nc, 0.0, _NEG).astype(
        jnp.float32).reshape(1, ncp)

    inv_temp = 1.0 / float(temperature)
    loss_scale = float(temperature) / float(base_temperature)
    grid = (nap // tq, ncp // tk)

    # Keep the contrast features VMEM-resident (DMA'd once) when they fit.
    cf_bytes = int(np.prod(cf.shape)) * cf.dtype.itemsize
    col_resident = cf_bytes <= max_resident_bytes
    vmem_limit = (40 * 2**20) if (col_resident and cf_bytes > 2 * 2**20) else None

    feat_row_spec = pl.BlockSpec((tq, dimp), lambda i, k: (i, 0))
    if col_resident:
        feat_col_spec = pl.BlockSpec((ncp, dimp), lambda i, k: (0, 0))
    else:
        feat_col_spec = pl.BlockSpec((tk, dimp), lambda i, k: (k, 0))
    row_vec_spec = pl.BlockSpec((tq, 1), lambda i, k: (i, 0))
    col_vec_spec = pl.BlockSpec((1, tk), lambda i, k: (0, k))
    out_spec = pl.BlockSpec((tq, 1), lambda i, k: (i, 0))

    out_shape = jax.ShapeDtypeStruct((nap, 1), jnp.float32)
    scratch_shapes = ([pltpu.VMEM((tq, 1), jnp.float32)] * 3       # m, l, sum(m*logit)
                      + [pltpu.VMEM((tq, tk), jnp.int32)])         # cached delta
    compiler_params = pltpu.CompilerParams(
        dimension_semantics=("parallel", "arbitrary"),
        vmem_limit_bytes=vmem_limit)

    if mask is None:
        # Label path (labels=None & mask=None == SimCLR: labels = arange).
        if labels is None:
            labels = jnp.arange(bsz, dtype=jnp.int32)
        else:
            labels = jnp.asarray(labels).reshape(-1)
            if labels.shape[0] != bsz:
                raise ValueError('Num of labels does not match num of features')
            labels = labels.astype(jnp.int32)
        col_labels = jnp.tile(labels, (n_views,))                  # (nc,)
        row_labels = col_labels[:na]                               # anchors, both modes
        lrow = _pad_to(row_labels.reshape(-1, 1), (nap, 1))
        lcol = _pad_to(col_labels.reshape(1, -1), (1, ncp), value=_PAD_LABEL)

        # Per-anchor positive count (self excluded), precomputed in XLA:
        # one O(bsz^2) compare instead of an N^2 in-kernel reduction.
        same = jnp.sum((labels[:, None] == labels[None, :]).astype(jnp.float32),
                       axis=1)
        cnt = n_views * same - 1.0
        pos_cnt = _pad_to(jnp.tile(cnt, (anchor_count,))[:na].reshape(-1, 1),
                          (nap, 1))

        kernel = functools.partial(_supcon_labels_kernel, inv_temp=inv_temp,
                                   loss_scale=loss_scale,
                                   col_resident=col_resident)
        per_anchor = pl.pallas_call(
            kernel,
            out_shape=out_shape,
            grid=grid,
            in_specs=[row_vec_spec,            # row labels      (nap, 1) i32
                      col_vec_spec,            # col labels      (1, ncp) i32
                      col_vec_spec,            # padding bias    (1, ncp) f32
                      row_vec_spec,            # positive counts (nap, 1) f32
                      feat_row_spec,
                      feat_col_spec],
            out_specs=out_spec,
            scratch_shapes=scratch_shapes,
            compiler_params=compiler_params,
        )(lrow, lcol, col_bias, pos_cnt, af, cf)
    else:
        # Explicit (possibly asymmetric / non-binary) mask: stream mask tiles.
        mask = jnp.asarray(mask).astype(jnp.float32)
        if mask.shape != (bsz, bsz):
            raise ValueError('`mask` must have shape [bsz, bsz]')
        # Stream the tiled mask as bf16 (halves HBM traffic; exact for 0/1
        # masks).  A modulo index_map over the original (bsz,bsz) mask would
        # avoid the tiled copy entirely when bsz % tile == 0.
        full_mask = jnp.tile(mask, (anchor_count, n_views))        # (na, nc)
        full_mask = _pad_to(full_mask, (nap, ncp)).astype(jnp.bfloat16)
        # Diag-corrected per-anchor positive mass, precomputed in XLA.
        cnt = n_views * jnp.sum(mask, axis=1) - jnp.diagonal(mask)
        pos_cnt = _pad_to(jnp.tile(cnt, (anchor_count,))[:na].reshape(-1, 1),
                          (nap, 1))

        kernel = functools.partial(_supcon_mask_kernel, inv_temp=inv_temp,
                                   loss_scale=loss_scale,
                                   col_resident=col_resident)
        per_anchor = pl.pallas_call(
            kernel,
            out_shape=out_shape,
            grid=grid,
            in_specs=[pl.BlockSpec((tq, tk), lambda i, k: (i, k)),  # mask tile
                      col_vec_spec,                                  # padding bias
                      row_vec_spec,                                  # positive counts
                      feat_row_spec,
                      feat_col_spec],
            out_specs=out_spec,
            scratch_shapes=scratch_shapes,
            compiler_params=compiler_params,
        )(full_mask, col_bias, pos_cnt, af, cf)

    # Final tiny reduction (mean over real anchors) stays in XLA.
    return jnp.mean(per_anchor[:na, 0])


# ---------------------------------------------------------------------------
# Pure-JAX reference (mirrors the PyTorch code; matmul done at compute_dtype)
# ---------------------------------------------------------------------------
def _supcon_loss_ref(features, labels=None, mask=None, *, temperature=0.07,
                     contrast_mode='all', base_temperature=0.07,
                     compute_dtype=jnp.bfloat16):
    bsz, n_views, dim = features.shape
    if labels is None and mask is None:
        mask = jnp.eye(bsz, dtype=jnp.float32)
    elif labels is not None:
        labels = jnp.asarray(labels).reshape(-1, 1)
        mask = (labels == labels.T).astype(jnp.float32)
    else:
        mask = jnp.asarray(mask).astype(jnp.float32)
    contrast = jnp.concatenate([features[:, v] for v in range(n_views)], axis=0)
    if contrast_mode == 'one':
        anchor = features[:, 0]
        anchor_count = 1
    else:
        anchor = contrast
        anchor_count = n_views
    a = anchor.astype(compute_dtype).astype(jnp.float32)
    c = contrast.astype(compute_dtype).astype(jnp.float32)
    logits = (a @ c.T) / temperature
    logits = logits - jnp.max(logits, axis=1, keepdims=True)
    na, nc = logits.shape
    rows = jnp.arange(na)
    logits_mask = jnp.ones((na, nc), jnp.float32).at[rows, rows].set(0.0)
    mask = jnp.tile(mask, (anchor_count, n_views)) * logits_mask
    exp_logits = jnp.exp(logits) * logits_mask
    log_prob = logits - jnp.log(jnp.sum(exp_logits, axis=1, keepdims=True))
    mean_log_prob_pos = jnp.sum(mask * log_prob, axis=1) / (jnp.sum(mask, axis=1) + 1e-9)
    loss = -(temperature / base_temperature) * mean_log_prob_pos
    return jnp.mean(loss)


if __name__ == "__main__":
    key = jax.random.PRNGKey(0)
    k_feat, k_lab, k_mask, k_feat2, k_lab2, k_mask2 = jax.random.split(key, 6)

    # Small shapes (bsz=8, n_views=2, dim=32).
    bsz, n_views, dim = 8, 2, 32
    features = jax.random.normal(k_feat, (bsz, n_views, dim), dtype=jnp.float32)
    features = features / jnp.linalg.norm(features, axis=-1, keepdims=True)
    labels = jax.random.randint(k_lab, (bsz,), 0, 3)
    rand_mask = (jax.random.uniform(k_mask, (bsz, bsz)) > 0.5).astype(jnp.float32)

    cases = [
        ("labels/all", features, dict(labels=labels)),
        ("simclr", features, dict()),
        ("explicit-mask", features, dict(mask=rand_mask)),
        ("labels/one", features, dict(labels=labels, contrast_mode='one')),
        ("labels/all/streamed-cols", features,
         dict(labels=labels, max_resident_bytes=0)),
    ]

    # Larger case: exercises multi-tile rows/cols, the online LSE across
    # column tiles, sentinel/bias padding and the two-row-block split.
    bsz2, dim2 = 288, 48
    feats2 = jax.random.normal(k_feat2, (bsz2, n_views, dim2), dtype=jnp.float32)
    feats2 = feats2 / jnp.linalg.norm(feats2, axis=-1, keepdims=True)
    labels2 = jax.random.randint(k_lab2, (bsz2,), 0, 10)
    mask2 = (jax.random.uniform(k_mask2, (bsz2, bsz2)) > 0.7).astype(jnp.float32)
    cases += [
        ("labels/all/large", feats2, dict(labels=labels2)),
        ("mask/large", feats2, dict(mask=mask2)),
    ]

    for name, feats, kwargs in cases:
        ref_kwargs = {kk: vv for kk, vv in kwargs.items()
                      if kk != 'max_resident_bytes'}
        out = jax.block_until_ready(supcon_loss(feats, **kwargs))
        ref = jax.block_until_ready(_supcon_loss_ref(feats, **ref_kwargs))
        np.testing.assert_allclose(np.asarray(out), np.asarray(ref),
                                   rtol=2e-3, atol=1e-3, err_msg=name)

    print("KERNEL_OK")
</pallas_src>

<mosaic_0001>
module attributes {stable_mosaic.version = 11 : i64} {
  func.func @_supcon_labels_kernel(%arg0: i32, %arg1: i32, %arg2: memref<16x1xi32, #tpu.memory_space<vmem>>, %arg3: memref<1x128xi32, #tpu.memory_space<vmem>>, %arg4: memref<1x128xf32, #tpu.memory_space<vmem>>, %arg5: memref<16x1xf32, #tpu.memory_space<vmem>>, %arg6: memref<16x128xbf16, #tpu.memory_space<vmem>>, %arg7: memref<128x128xbf16, #tpu.memory_space<vmem>>, %arg8: memref<16x1xf32, #tpu.memory_space<vmem>>, %arg9: memref<16x1xf32, #tpu.memory_space<vmem>>, %arg10: memref<16x1xf32, #tpu.memory_space<vmem>>, %arg11: memref<16x1xf32, #tpu.memory_space<vmem>>, %arg12: memref<16x128xi32, #tpu.memory_space<vmem>>) attributes {dimension_semantics = [#tpu.dimension_semantics<parallel>, #tpu.dimension_semantics<arbitrary>], iteration_bounds = array<i64: 1, 1>, scalar_prefetch = 0 : i64, scratch_operands = 4 : i64, tpu.core_type = #tpu.core_type<tc>, window_params = [{transform_indices = @transform_0, window_bounds = array<i64: 16, 1>}, {transform_indices = @transform_1, window_bounds = array<i64: 1, 128>}, {transform_indices = @transform_2, window_bounds = array<i64: 1, 128>}, {transform_indices = @transform_3, window_bounds = array<i64: 16, 1>}, {transform_indices = @transform_4, window_bounds = array<i64: 16, 128>}, {pipeline_mode = #tpu.pipeline_mode<synchronous>, transform_indices = @transform_5, window_bounds = array<i64: 128, 128>}, {transform_indices = @transform_6, window_bounds = array<i64: 16, 1>}]} {
    %c0_i32 = arith.constant 0 : i32
    %0 = arith.cmpi eq, %arg1, %c0_i32 : i32
    %1 = arith.extui %0 : i1 to i32
    %c0_i32_0 = arith.constant 0 : i32
    %2 = arith.cmpi ne, %1, %c0_i32_0 : i32
    scf.if %2 {
      %cst_32 = arith.constant 0xFF800000 : f32
      %54 = vector.broadcast %cst_32 : f32 to vector<16x1xf32>
      %c0_33 = arith.constant 0 : index
      %c0_34 = arith.constant 0 : index
      %55 = vector.load %arg9[%c0_33, %c0_34] : memref<16x1xf32, #tpu.memory_space<vmem>>, vector<16x1xf32>
      tpu.vector_store %arg9[%c0_33, %c0_34], %54 {strides = array<i32>} : memref<16x1xf32, #tpu.memory_space<vmem>>, vector<16x1xf32>,
      %cst_35 = arith.constant 0.000000e+00 : f32
      %56 = vector.broadcast %cst_35 : f32 to vector<16x1xf32>
      %c0_36 = arith.constant 0 : index
      %c0_37 = arith.constant 0 : index
      %57 = vector.load %arg10[%c0_36, %c0_37] : memref<16x1xf32, #tpu.memory_space<vmem>>, vector<16x1xf32>
      tpu.vector_store %arg10[%c0_36, %c0_37], %56 {strides = array<i32>} : memref<16x1xf32, #tpu.memory_space<vmem>>, vector<16x1xf32>,
      %cst_38 = arith.constant 0.000000e+00 : f32
      %58 = vector.broadcast %cst_38 : f32 to vector<16x1xf32>
      %c0_39 = arith.constant 0 : index
      %c0_40 = arith.constant 0 : index
      %59 = vector.load %arg11[%c0_39, %c0_40] : memref<16x1xf32, #tpu.memory_space<vmem>>, vector<16x1xf32>
      tpu.vector_store %arg11[%c0_39, %c0_40], %58 {strides = array<i32>} : memref<16x1xf32, #tpu.memory_space<vmem>>, vector<16x1xf32>,
      %60 = tpu.iota {dimensions = array<i32: 1>} : vector<16x128xi32>
      %61 = tpu.iota {dimensions = array<i32: 0>} : vector<16x128xi32>
      %62 = arith.subi %60, %61 : vector<16x128xi32>
      %c0_41 = arith.constant 0 : index
      %c0_42 = arith.constant 0 : index
      %63 = vector.load %arg12[%c0_41, %c0_42] : memref<16x128xi32, #tpu.memory_space<vmem>>, vector<16x128xi32>
      tpu.vector_store %arg12[%c0_41, %c0_42], %62 {strides = array<i32>} : memref<16x128xi32, #tpu.memory_space<vmem>>, vector<16x128xi32>,
    } else {
    }
    %c128_i32 = arith.constant 128 : i32
    %3 = arith.muli %arg1, %c128_i32 : i32
    %4 = tpu.assume_multiple %3, 128 : i32
    %5 = arith.index_cast %4 : i32 to index
    %c0 = arith.constant 0 : index
    %6 = vector.load %arg7[%5, %c0] : memref<128x128xbf16, #tpu.memory_space<vmem>>, vector<128x128xbf16>
    %c0_1 = arith.constant 0 : index
    %c0_2 = arith.constant 0 : index
    %7 = vector.load %arg6[%c0_1, %c0_2] : memref<16x128xbf16, #tpu.memory_space<vmem>>, vector<16x128xbf16>
    %cst = arith.constant dense<0.000000e+00> : vector<16x128xf32>
    %8 = tpu.matmul %7, %6, %cst {dimension_numbers = #tpu.dot_dimension_numbers<[1], [1], [0], [0], [0, 0, 1, 0], [], []>} : vector<16x128xbf16>, vector<128x128xbf16>, vector<16x128xf32> -> vector<16x128xf32>
    %cst_3 = arith.constant 14.2857141 : f32
    %9 = vector.broadcast %cst_3 : f32 to vector<16x128xf32>
    %10 = arith.mulf %8, %9 : vector<16x128xf32>
    %c0_4 = arith.constant 0 : index
    %c0_5 = arith.constant 0 : index
    %11 = vector.load %arg12[%c0_4, %c0_5] : memref<16x128xi32, #tpu.memory_space<vmem>>, vector<16x128xi32>
    %c16_i32 = arith.constant 16 : i32
    %12 = arith.muli %arg0, %c16_i32 : i32
    %c128_i32_6 = arith.constant 128 : i32
    %13 = arith.muli %arg1, %c128_i32_6 : i32
    %14 = arith.subi %12, %13 : i32
    %15 = vector.broadcast %14 : i32 to vector<16x128xi32>
    %16 = arith.cmpi ne, %11, %15 : vector<16x128xi32>
    %c0_7 = arith.constant 0 : index
    %c0_8 = arith.constant 0 : index
    %17 = vector.load %arg4[%c0_7, %c0_8] : memref<1x128xf32, #tpu.memory_space<vmem>>, vector<1x128xf32>
    %18 = vector.broadcast %17 : vector<1x128xf32> to vector<16x128xf32>
    %19 = arith.addf %10, %18 : vector<16x128xf32>
    %cst_9 = arith.constant -1.000000e+30 : f32
    %20 = vector.broadcast %cst_9 : f32 to vector<16x128xf32>
    %21 = arith.select %16, %19, %20 : vector<16x128xi1>, vector<16x128xf32>
    %c0_10 = arith.constant 0 : index
    %c0_11 = arith.constant 0 : index
    %22 = vector.load %arg9[%c0_10, %c0_11] : memref<16x1xf32, #tpu.memory_space<vmem>>, vector<16x1xf32>
    %cst_12 = arith.constant dense<0xFF800000> : vector<16xf32>
    %23 = vector.multi_reduction <maximumf>, %21, %cst_12 [1] : vector<16x128xf32> to vector<16xf32>
    %24 = vector.shape_cast %23 : vector<16xf32> to vector<16x1xf32>
    %25 = arith.maximumf %22, %24 : vector<16x1xf32>
    %26 = arith.subf %22, %25 : vector<16x1xf32>
    %27 = math.exp %26 : vector<16x1xf32>
    %c0_13 = arith.constant 0 : index
    %c0_14 = arith.constant 0 : index
    %28 = vector.load %arg10[%c0_13, %c0_14] : memref<16x1xf32, #tpu.memory_space<vmem>>, vector<16x1xf32>
    %29 = arith.mulf %27, %28 : vector<16x1xf32>
    %30 = vector.broadcast %25 : vector<16x1xf32> to vector<16x128xf32>
    %31 = arith.subf %21, %30 : vector<16x128xf32>
    %32 = math.exp %31 : vector<16x128xf32>
    %cst_15 = arith.constant dense<0.000000e+00> : vector<16xf32>
    %33 = vector.multi_reduction <add>, %32, %cst_15 [1] : vector<16x128xf32> to vector<16xf32>
    %34 = vector.shape_cast %33 : vector<16xf32> to vector<16x1xf32>
    %35 = arith.addf %29, %34 : vector<16x1xf32>
    %c0_16 = arith.constant 0 : index
    %c0_17 = arith.constant 0 : index
    %36 = vector.load %arg10[%c0_16, %c0_17] : memref<16x1xf32, #tpu.memory_space<vmem>>, vector<16x1xf32>
    tpu.vector_store %arg10[%c0_16, %c0_17], %35 {strides = array<i32>} : memref<16x1xf32, #tpu.memory_space<vmem>>, vector<16x1xf32>,
    %c0_18 = arith.constant 0 : index
    %c0_19 = arith.constant 0 : index
    %37 = vector.load %arg9[%c0_18, %c0_19] : memref<16x1xf32, #tpu.memory_space<vmem>>, vector<16x1xf32>
    tpu.vector_store %arg9[%c0_18, %c0_19], %25 {strides = array<i32>} : memref<16x1xf32, #tpu.memory_space<vmem>>, vector<16x1xf32>,
    %c0_20 = arith.constant 0 : index
    %c0_21 = arith.constant 0 : index
    %38 = vector.load %arg2[%c0_20, %c0_21] : memref<16x1xi32, #tpu.memory_space<vmem>>, vector<16x1xi32>
    %c0_22 = arith.constant 0 : index
    %c0_23 = arith.constant 0 : index
    %39 = vector.load %arg3[%c0_22, %c0_23] : memref<1x128xi32, #tpu.memory_space<vmem>>, vector<1x128xi32>
    %40 = vector.broadcast %38 : vector<16x1xi32> to vector<16x128xi32>
    %41 = vector.broadcast %39 : vector<1x128xi32> to vector<16x128xi32>
    %42 = arith.cmpi eq, %40, %41 : vector<16x128xi32>
    %43 = arith.andi %42, %16 : vector<16x128xi1>
    %c0_24 = arith.constant 0 : index
    %c0_25 = arith.constant 0 : index
    %44 = vector.load %arg11[%c0_24, %c0_25] : memref<16x1xf32, #tpu.memory_space<vmem>>, vector<16x1xf32>
    %cst_26 = arith.constant 0.000000e+00 : f32
    %45 = vector.broadcast %cst_26 : f32 to vector<16x128xf32>
    %46 = arith.select %43, %10, %45 : vector<16x128xi1>, vector<16x128xf32>
    %cst_27 = arith.constant dense<0.000000e+00> : vector<16xf32>
    %47 = vector.multi_reduction <add>, %46, %cst_27 [1] : vector<16x128xf32> to vector<16xf32>
    %48 = vector.shape_cast %47 : vector<16xf32> to vector<16x1xf32>
    %49 = arith.addf %44, %48 : vector<16x1xf32>
    %c0_28 = arith.constant 0 : index
    %c0_29 = arith.constant 0 : index
    %50 = vector.load %arg11[%c0_28, %c0_29] : memref<16x1xf32, #tpu.memory_space<vmem>>, vector<16x1xf32>
    tpu.vector_store %arg11[%c0_28, %c0_29], %49 {strides = array<i32>} : memref<16x1xf32, #tpu.memory_space<vmem>>, vector<16x1xf32>,
    %c0_i32_30 = arith.constant 0 : i32
    %51 = arith.cmpi eq, %arg1, %c0_i32_30 : i32
    %52 = arith.extui %51 : i1 to i32
    %c0_i32_31 = arith.constant 0 : i32
    %53 = arith.cmpi ne, %52, %c0_i32_31 : i32
    scf.if %53 {
      %c0_32 = arith.constant 0 : index
      %c0_33 = arith.constant 0 : index
      %54 = vector.load %arg5[%c0_32, %c0_33] : memref<16x1xf32, #tpu.memory_space<vmem>>, vector<16x1xf32>
      %c0_34 = arith.constant 0 : index
      %c0_35 = arith.constant 0 : index
      %55 = vector.load %arg9[%c0_34, %c0_35] : memref<16x1xf32, #tpu.memory_space<vmem>>, vector<16x1xf32>
      %c0_36 = arith.constant 0 : index
      %c0_37 = arith.constant 0 : index
      %56 = vector.load %arg10[%c0_36, %c0_37] : memref<16x1xf32, #tpu.memory_space<vmem>>, vector<16x1xf32>
      %57 = math.log %56 : vector<16x1xf32>
      %58 = arith.addf %55, %57 : vector<16x1xf32>
      %c0_38 = arith.constant 0 : index
      %c0_39 = arith.constant 0 : index
      %59 = vector.load %arg11[%c0_38, %c0_39] : memref<16x1xf32, #tpu.memory_space<vmem>>, vector<16x1xf32>
      %60 = arith.mulf %58, %54 : vector<16x1xf32>
      %61 = arith.subf %59, %60 : vector<16x1xf32>
      %cst_40 = arith.constant 9.99999971E-10 : f32
      %62 = vector.broadcast %cst_40 : f32 to vector<16x1xf32>
      %63 = arith.addf %54, %62 : vector<16x1xf32>
      %64 = arith.divf %61, %63 : vector<16x1xf32>
      %cst_41 = arith.constant -1.000000e+00 : f32
      %65 = vector.broadcast %cst_41 : f32 to vector<16x1xf32>
      %66 = arith.mulf %65, %64 : vector<16x1xf32>
      %c0_42 = arith.constant 0 : index
      %c0_43 = arith.constant 0 : index
      %67 = vector.load %arg8[%c0_42, %c0_43] : memref<16x1xf32, #tpu.memory_space<vmem>>, vector<16x1xf32>
      tpu.vector_store %arg8[%c0_42, %c0_43], %66 {strides = array<i32>} : memref<16x1xf32, #tpu.memory_space<vmem>>, vector<16x1xf32>,
    } else {
    }
    return
  }
  func.func @transform_0(%arg0: i32, %arg1: i32) -> (i32, i32) {
    %c0_i32 = arith.constant 0 : i32
    %c0_i32_0 = arith.constant 0 : i32
    return %arg0, %c0_i32 : i32, i32
  }
  func.func @transform_1(%arg0: i32, %arg1: i32) -> (i32, i32) {
    %c0_i32 = arith.constant 0 : i32
    %c0_i32_0 = arith.constant 0 : i32
    return %c0_i32, %arg1 : i32, i32
  }
  func.func @transform_2(%arg0: i32, %arg1: i32) -> (i32, i32) {
    %c0_i32 = arith.constant 0 : i32
    %c0_i32_0 = arith.constant 0 : i32
    return %c0_i32, %arg1 : i32, i32
  }
  func.func @transform_3(%arg0: i32, %arg1: i32) -> (i32, i32) {
    %c0_i32 = arith.constant 0 : i32
    %c0_i32_0 = arith.constant 0 : i32
    return %arg0, %c0_i32 : i32, i32
  }
  func.func @transform_4(%arg0: i32, %arg1: i32) -> (i32, i32) {
    %c0_i32 = arith.constant 0 : i32
    %c0_i32_0 = arith.constant 0 : i32
    return %arg0, %c0_i32 : i32, i32
  }
  func.func @transform_5(%arg0: i32, %arg1: i32) -> (i32, i32) {
    %c0_i32 = arith.constant 0 : i32
    %c0_i32_0 = arith.constant 0 : i32
    %c0_i32_1 = arith.constant 0 : i32
    return %c0_i32, %c0_i32_0 : i32, i32
  }
  func.func @transform_6(%arg0: i32, %arg1: i32) -> (i32, i32) {
    %c0_i32 = arith.constant 0 : i32
    %c0_i32_0 = arith.constant 0 : i32
    return %arg0, %c0_i32 : i32, i32
  }
}

</mosaic_0001>

<bundles_post_ra>
// kernel: tpu_custom_call.1
= control target key start
LH: loop header
LB: loop body
LE: loop exit
PB: predicated region body
PF: predicated region fallthrough
CT: control target
= control target key end

     0   :  { %11 = vsyncpa [#allocation7], 0  ;;  %s406_s21 = smov [#allocation6]   ;;  %s517_s0 = inlined_call_operand.vmem [shape: s32[16,1], index: 0, kind: input, shape index: {}]   ;;  %s518_s1 = inlined_call_operand.vmem [shape: s32[1,128], index: 1, kind: input, shape index: {}]   ;;  %s519_s2 = inlined_call_operand.vmem [shape: f32[1,128], index: 2, kind: input, shape index: {}]   ;;  %s520_s3 = inlined_call_operand.vmem [shape: f32[16,1], index: 3, kind: input, shape index: {}]   ;;  %s521_s4 = inlined_call_operand.vmem [shape: bf16[16,128], index: 4, kind: input, shape index: {}]   ;;  %s522_s5 = inlined_call_operand.hbm [shape: bf16[128,128], index: 5, kind: input, shape index: {}]   ;;  %s523_s6 = inlined_call_operand.vmem [shape: f32[16,1], index: 6, kind: output, shape index: {}]  }
   0x1   :  { %s27_s22 = sshll.u32 %s406_s21, 4  ;;  %s382_s25 = scalar_lea.hbm %s522_s5, 1024  ;;  %s28_s22 = int_to_ptr.vmem [resolvable:$true] %s27_s22 }
   0x2   :  { %p383_p0 = scmp.ne.s32.totalorder %s522_s5, %s382_s25  ;;  %p386_p1 = scmp.lt.u32.totalorder %s382_s25, %s522_s5 }
   0x4   :  { %p388_p2 = pnand %p386_p1, %p383_p0 }
   0x6   :  { %391 = shalt.err (!%p388_p2)
}
   0x7   :  { %s392_s30 = scalar_lea.vmem %s28_s22, 1024  ;;  %p397_p4 = scmp.lt.s32.totalorder %s28_s22, %s28_s22 }
   0x8   :  { %p393_p3 = scmp.ne.s32.totalorder %s28_s22, %s392_s30  ;;  %p398_p5 = scmp.lt.s32.totalorder %s392_s30, %s392_s30 }
   0xa   :  { %p399_p6 = por %p398_p5, %p397_p4 }
   0xc   :  { %p400_p7 = pnand %p399_p6, %p393_p3 }
   0xe   :  { %403 = shalt.err (!%p400_p7)
}
   0xf   :  { %s407_s7 = smov 64   ;;  %s408_s8 = smov 4  }
  0x10   :  { %33 = dma.hbm_to_vmem [thread:$0]  %s522_s5, 1024, %s28_s22, [#allocation7], %s407_s7, %s407_s7, %s408_s8  }
  0x11   :  { %404 = dma.done.wait [#allocation7], 1024  }
  0x12   :  { %405 = vsyncadd [#allocation7], 4294966272  ;;  %v409_v0 = vmov 0.0   ;;  %vm410_vm0 = vmmov 0   ;;  %v357_v1 = vld [vmem:[#allocation6] sm:$0xff]   ;;  %v358_v2 = vld [vmem:[#allocation6 + $0x8] sm:$0xff]   ;;  %v49_v12 = vlaneseq }
  0x13   :  { %328 = vmatprep.subr.bf16.mxu0 %v409_v0  ;;  %344 = vmatprep.mubr.msk.bf16.mxu0 %vm410_vm0, %v409_v0  ;;  %v359_v3 = vld [vmem:[#allocation6 + $0x10] sm:$0xff]   ;;  %v360_v4 = vld [vmem:[#allocation6 + $0x18] sm:$0xff]   ;;  %v361_v5 = vld [vmem:[#allocation6 + $0x20] sm:$0xff]   ;;  %v411_v10 = vmov 0   ;;  %vm42_vm1 = vcmask 7168   ;;  %v412_v11 = vmov -inf  }
  0x14   :  { %329 = vmatpush3.bf16.xpose.msra.mxu0 %v357_v1  ;;  %v362_v6 = vld [vmem:[#allocation6 + $0x28] sm:$0xff]   ;;  %v363_v7 = vld [vmem:[#allocation6 + $0x30] sm:$0xff]   ;;  %v364_v8 = vld [vmem:[#allocation6 + $0x38] sm:$0xff]   ;;  %356 = vset.pattern.permute.xlu0 %v411_v10  ;;  %43 = vst.msk [vmem:[#allocation2] sm:$0xff] %vm42_vm1, %v412_v11  ;;  %v50_v13 = vand.u32 127, %v49_v12  ;;  %v52_v14 = vshrl.u32 %v49_v12, 7 }
  0x15   :  { %330 = vmatprep.subr.bf16.mxu0 %v409_v0  ;;  %v365_v9 = vld [vmem:[%s521_s4] sm:$0xff]   ;;  %355 = vset.pattern.permute.xlu1 %v411_v10  ;;  %44 = vst.msk [vmem:[#allocation2 + $0x8] sm:$0xff] %vm42_vm1, %v412_v11  ;;  %45 = vst.msk [vmem:[#allocation3] sm:$0xff] %vm42_vm1, %v409_v0  ;;  %v242_v40 = vld [vmem:[%s517_s0 + $0x8] sm:$0xff] }
  0x16   :  { %46 = vst.msk [vmem:[#allocation3 + $0x8] sm:$0xff] %vm42_vm1, %v409_v0  ;;  %47 = vst.msk [vmem:[#allocation4] sm:$0xff] %vm42_vm1, %v409_v0  ;;  %v54_v15 = vsub.s32 %v50_v13, %v52_v14  ;;  %v53_v16 = vadd.s32 8, %v52_v14  ;;  %v317_v18 = vld [vmem:[%s519_s2] ss:$0 sm:$0xff]  ;;  %v274_v12 = vld [vmem:[%s520_s3 + $0x8] sm:$0xff] }
  0x17   :  { %48 = vst.msk [vmem:[#allocation4 + $0x8] sm:$0xff] %vm42_vm1, %v409_v0  ;;  %v241_v31 = vld [vmem:[%s517_s0] sm:$0xff] }
  0x18   :  { %vm472_vm2 = vcmp.ne.s32.totalorder %v54_v15, 0  ;;  %v55_v23 = vsub.s32 %v50_v13, %v53_v16  ;;  %v318_v41 = vld [vmem:[%s518_s1] ss:$0 sm:$0xff]  ;;  %v292_v13 = vadd.f32 1e-09, %v274_v12 }
  0x1a   :  { %vm478_vm3 = vcmp.ne.s32.totalorder %v55_v23, 0 }
  0x1b   :  { %v196_v32 = vld [vmem:[#allocation2] sm:$0xff] }
  0x1c   :  { %331 = vmatpush3.bf16.xpose.msra.mxu0 %v358_v2  ;;  %v197_v35 = vld [vmem:[#allocation2 + $0x8] sm:$0xff]  ;;  %v210_v60 = vld [vmem:[#allocation3] sm:$0xff] }
  0x1d   :  { %332 = vmatprep.subr.bf16.mxu0 %v409_v0  ;;  %v258_v54 = vld [vmem:[#allocation4] sm:$0xff] }
  0x24   :  { %333 = vmatpush3.bf16.xpose.msra.mxu0 %v359_v3 }
  0x25   :  { %334 = vmatprep.subr.bf16.mxu0 %v409_v0 }
  0x2c   :  { %335 = vmatpush3.bf16.xpose.msra.mxu0 %v360_v4 }
  0x2d   :  { %336 = vmatprep.subr.bf16.mxu0 %v409_v0 }
  0x34   :  { %337 = vmatpush3.bf16.xpose.msra.mxu0 %v361_v5  ;;  %v259_v5 = vld [vmem:[#allocation4 + $0x8] sm:$0xff] }
  0x35   :  { %338 = vmatprep.subr.bf16.mxu0 %v409_v0 }
  0x3c   :  { %339 = vmatpush3.bf16.xpose.msra.mxu0 %v362_v6 }
  0x3d   :  { %340 = vmatprep.subr.bf16.mxu0 %v409_v0 }
  0x44   :  { %341 = vmatpush3.bf16.xpose.msra.mxu0 %v363_v7 }
  0x45   :  { %342 = vmatprep.subr.bf16.mxu0 %v409_v0  ;;  %v211_v0 = vld [vmem:[#allocation3 + $0x8] sm:$0xff] }
  0x4c   :  { %343 = vmatpush3.bf16.xpose.msra.mxu0 %v364_v8  ;;  %v273_v8 = vld [vmem:[%s520_s3] sm:$0xff] }
  0x4d   :  { %v291_v10 = vadd.f32 1e-09, %v273_v8 }
  0x53   :  { %345 = vmatmul.mubr.bf16.vlgmr.msra.gmra.mrb[0].mxu0 %v365_v9 }
 0x126   :  { %v169_v17 = vpop.f32.mrb[0].mxu0 }
 0x127   :  { %v176_v19 = vmul.f32 14.285714, %v169_v17  ;;  %v346_v20 = vpop.f32.mrb[1].mxu0 }
 0x128   :  { %v172_v21 = vpop.f32.mrb[2].mxu0 }
 0x129   :  { %v177_v24 = vmul.f32 14.285714, %v172_v21  ;;  %v347_v25 = vpop.f32.mrb[3].mxu0  ;;  %v192_v26 = vadd.f32 %v317_v18, %v176_v19 }
 0x12b   :  { %v194_v27 = vsel %vm472_vm2, %v192_v26, -1e+30  ;;  %v193_v28 = vadd.f32 %v317_v18, %v177_v24 }
 0x12c   :  { %198 = vmax.xlane.f32.xlu0 %v194_v27 }
 0x12d   :  { %v195_v30 = vsel %vm478_vm3, %v193_v28, -1e+30 }
 0x130   :  { %200 = vmax.xlane.f32.xlu0 %v195_v30 }
 0x146   :  { %245 = vperm.xlu0 %356, %v241_v31  }
 0x1b9   :  { %v199_v33 = vpop.xlane.xlu0 %198 }
 0x1ba   :  { %v202_v34 = vmax.f32 %v196_v32, %v199_v33 }
 0x1bc   :  { %v204_v36 = vsub.f32 %v196_v32, %v202_v34  ;;  %239 = vst.msk [vmem:[#allocation2] sm:$0xff] %vm42_vm1, %v202_v34  ;;  %216 = vperm.xlu1 %355, %v202_v34  }
 0x1bd   :  { %v201_v37 = vpop.xlane.xlu0 %200 }
 0x1be   :  { %v203_v38 = vmax.f32 %v197_v35, %v201_v37  ;;  %v206_v57 = vmul.f32 1.442695, %v204_v36 }
 0x1c0   :  { %v205_v39 = vsub.f32 %v197_v35, %v203_v38  ;;  %240 = vst.msk [vmem:[#allocation2 + $0x8] sm:$0xff] %vm42_vm1, %v203_v38  ;;  %221 = vperm.xlu1 %355, %v203_v38  }
 0x1c2   :  { %v208_v58 = vmul.f32 1.442695, %v205_v39 }
 0x1c3   :  { %v275_v16 = vld [vmem:[#allocation2] sm:$0xff] }
 0x1c4   :  { %248 = vperm.xlu1 %355, %v242_v40  }
 0x1c5   :  { %v246_v42 = vpop.permute.xlu0 %245 }
 0x1c6   :  { %vm254_vm4 = vcmp.eq.s32.totalorder %v246_v42, %v318_v41 }
 0x1c7   :  { %vm256_vm5 = vmand %vm254_vm4, %vm472_vm2  ;;  %v276_v22 = vld [vmem:[#allocation2 + $0x8] sm:$0xff] }
 0x1c8   :  { %v260_v43 = vsel %vm256_vm5, %v176_v19, 0.0 }
 0x1c9   :  { %262 = vadd.xlane.f32.xlu0 %v260_v43 }
 0x23b   :  { %v217_v44 = vpop.permute.xlu1 %216 }
 0x23c   :  { %v224_v45 = vsub.f32 %v194_v27, %v217_v44 }
 0x23e   :  { %v226_v46 = vmul.f32 1.442695, %v224_v45 }
 0x23f   :  { %v222_v47 = vpop.permute.xlu1 %221 }
 0x240   :  { %366 = vpow2.f32 %v226_v46  ;;  %v225_v48 = vsub.f32 %v195_v30, %v222_v47 }
 0x242   :  { %v228_v49 = vmul.f32 1.442695, %v225_v48 }
 0x243   :  { %v249_v50 = vpop.permute.xlu1 %248 }
 0x244   :  { %368 = vpow2.f32 %v228_v49  ;;  %vm255_vm6 = vcmp.eq.s32.totalorder %v249_v50, %v318_v41 }
 0x245   :  { %vm257_vm7 = vmand %vm255_vm6, %vm478_vm3  ;;  %370 = vpow2.f32 %v206_v57 }
 0x246   :  { %v261_v53 = vsel %vm257_vm7, %v177_v24, 0.0  ;;  %372 = vpow2.f32 %v208_v58 }
 0x24a   :  { %v367_v51 = vpop.eup %366 }
 0x24b   :  { %230 = vadd.xlane.f32.xlu1 %v367_v51 }
 0x24e   :  { %v369_v52 = vpop.eup %368 }
 0x24f   :  { %232 = vadd.xlane.f32.xlu1 %v369_v52  ;;  %v371_v59 = vpop.eup %370 }
 0x250   :  { %v212_v61 = vmul.f32 %v371_v59, %v210_v60  ;;  %v373_v62 = vpop.eup %372 }
 0x251   :  { %v213_v2 = vmul.f32 %v373_v62, %v211_v0 }
 0x253   :  { %264 = vadd.xlane.f32.xlu1 %v261_v53 }
 0x256   :  { %v263_v55 = vpop.xlane.xlu0 %262 }
 0x257   :  { %v266_v56 = vadd.f32 %v263_v55, %v258_v54 }
 0x259   :  { %268 = vst.msk [vmem:[#allocation4] sm:$0xff] %vm42_vm1, %v266_v56 }
 0x260   :  { %v285_v23 = vld [vmem:[#allocation4] sm:$0xff] }
 0x2d8   :  { %v231_v63 = vpop.xlane.xlu1 %230 }
 0x2d9   :  { %v234_v1 = vadd.f32 %v231_v63, %v212_v61 }
 0x2db   :  { %237 = vst.msk [vmem:[#allocation3] sm:$0xff] %vm42_vm1, %v234_v1 }
 0x2dc   :  { %v233_v3 = vpop.xlane.xlu1 %232 }
 0x2dd   :  { %v235_v4 = vadd.f32 %v233_v3, %v213_v2 }
 0x2df   :  { %238 = vst.msk [vmem:[#allocation3 + $0x8] sm:$0xff] %vm42_vm1, %v235_v4 }
 0x2e0   :  { %v265_v6 = vpop.xlane.xlu1 %264 }
 0x2e1   :  { %v267_v7 = vadd.f32 %v265_v6, %v259_v5 }
 0x2e2   :  { %v277_v9 = vld [vmem:[#allocation3] sm:$0xff] }
 0x2e3   :  { %374 = vlog2.f32 %v277_v9  ;;  %269 = vst.msk [vmem:[#allocation4 + $0x8] sm:$0xff] %vm42_vm1, %v267_v7 }
 0x2e6   :  { %v278_v11 = vld [vmem:[#allocation3 + $0x8] sm:$0xff] }
 0x2e7   :  { %376 = vlog2.f32 %v278_v11 }
 0x2e8   :  { %378 = vrcp.f32 %v291_v10 }
 0x2e9   :  { %380 = vrcp.f32 %v292_v13 }
 0x2ea   :  { %v286_v29 = vld [vmem:[#allocation4 + $0x8] sm:$0xff] }
 0x2ed   :  { %v375_v14 = vpop.eup %374 }
 0x2ee   :  { %v280_v15 = vmul.f32 0.6931472, %v375_v14 }
 0x2f0   :  { %v283_v17 = vadd.f32 %v280_v15, %v275_v16 }
 0x2f1   :  { %v377_v18 = vpop.eup %376 }
 0x2f2   :  { %v287_v19 = vmul.f32 %v283_v17, %v273_v8  ;;  %v282_v20 = vmul.f32 0.6931472, %v377_v18  ;;  %v379_v21 = vpop.eup %378 }
 0x2f3   :  { %v381_v28 = vpop.eup %380 }
 0x2f4   :  { %v289_v24 = vsub.f32 %v285_v23, %v287_v19  ;;  %v284_v25 = vadd.f32 %v282_v20, %v276_v22 }
 0x2f6   :  { %v294_v26 = vmul.f32 %v379_v21, %v289_v24  ;;  %v288_v27 = vmul.f32 %v284_v25, %v274_v12 }
 0x2f8   :  { %v297_v30 = vmul.f32 -1.0, %v294_v26  ;;  %v290_v31 = vsub.f32 %v286_v29, %v288_v27 }
 0x2fa   :  { %299 = vst.msk [vmem:[%s523_s6] sm:$0xff] %vm42_vm1, %v297_v30  ;;  %v296_v32 = vmul.f32 %v381_v28, %v290_v31 }
 0x2fc   :  { %v298_v33 = vmul.f32 -1.0, %v296_v32 }
 0x2fe   :  { %300 = vst.msk [vmem:[%s523_s6 + $0x8] sm:$0xff] %vm42_vm1, %v298_v33 }
 0x2ff   :  { %305 = vsyncpa [#allocation7], 1 }

</bundles_post_ra>
